<compile_context>
chip_gen: v7x
topology: tpu7x:2x2x1
jax: 0.10.0
libtpu: 0.0.40
codegen_flags: <defaults>
</compile_context>

<pallas_src>
import functools
import math

import jax
import jax.numpy as jnp
from jax.experimental import pallas as pl
from jax.experimental.pallas import tpu as pltpu

_LANE = 128      # lane width: feature tiles are multiples of 128
_SUBLANE = 8     # sublane alignment for row tiles


def _tpu_vmem_bytes():
    try:
        info = pltpu.get_tpu_info()
        for attr in ("vmem_capacity_bytes", "vmem_bytes"):
            v = getattr(info, attr, None)
            if v:
                return int(v)
    except Exception:
        pass
    return 64 * 1024 * 1024            # conservative default (v7x per-TC VMEM)


_VMEM_BYTES = _tpu_vmem_bytes()
_BIG_VMEM = _VMEM_BYTES >= 100 * 1024 * 1024           # v5e / v6e (128 MiB)
_VMEM_LIMIT = (64 if _BIG_VMEM else 32) * 1024 * 1024  # scoped-VMEM cap
if _BIG_VMEM:                                          # v5e / v6e
    _TM, _TN, _TK = 512, 512, 512
else:                                                  # v7x (64 MiB VMEM)
    _TM, _TN, _TK = 256, 256, 384
# full-weight-resident threshold for the gated-residual matmuls
_RESIDENT_W_BYTES = min(_VMEM_LIMIT // 3, 16 * 1024 * 1024)
# requested pipeline depth for K-streamed matmul operands (only when K is deep)
_KBUF = 3 if _BIG_VMEM else 2


# ----------------------------------------------------------------------------
# tiling helpers
# ----------------------------------------------------------------------------
def _round_up(x, m):
    return (x + m - 1) // m * m


def _pad_to(x, shape):
    pads = [(0, s - d) for d, s in zip(x.shape, shape)]
    if all(p == (0, 0) for p in pads):
        return x
    return jnp.pad(x, pads)


def _row_tiles(dim, target=_TM):
    """(padded_dim, tile) for a row (sublane / M) axis."""
    dp = _round_up(max(dim, 1), _SUBLANE)
    if dp <= target:
        return dp, dp
    for t in range(target, 0, -_SUBLANE):
        if dp % t == 0:
            return dp, t
    return _round_up(dp, target), target


def _lane_tiles(dim, target):
    """(padded_dim, tile) for a feature (lane) axis.  Dims below one lane tile
    stay at full width (no 32x padding of tiny-K projections)."""
    if dim <= _LANE:
        return dim, dim
    dp = _round_up(dim, _LANE)
    if dp <= target:
        return dp, dp
    for t in range(target, 0, -_LANE):
        if dp % t == 0:
            return dp, t
    return _round_up(dp, target), target


def _seq_tile(dim, target=256):
    """Tile for an in-frame / sequence axis; always a divisor (or the full dim)."""
    for t in (512, 256, 128, 64, 32, 16, 8):
        if t <= target and dim % t == 0:
            return t
    return dim


def _bspec(shape, index_map, buffers=None):
    """BlockSpec with an optional deeper-pipelining request; falls back cleanly
    if the pipeline_mode kwarg / pl.Buffered is unavailable."""
    if buffers is not None and buffers > 2:
        try:
            return pl.BlockSpec(shape, index_map, pipeline_mode=pl.Buffered(buffers))
        except Exception:
            pass
    return pl.BlockSpec(shape, index_map)


def _frames_per_tile(R, Fp, target):
    """Largest divisor mf of R with mf * Fp <= max(target, Fp)."""
    mf = 1
    for cand in range(1, R + 1):
        if R % cand == 0 and cand * Fp <= max(target, Fp):
            mf = cand
    return mf


# ----------------------------------------------------------------------------
# Pallas kernels
# ----------------------------------------------------------------------------
def _linear_kernel(x_ref, w_ref, b_ref, o_ref, acc_ref, *, activation):
    k = pl.program_id(2)

    @pl.when(k == 0)
    def _():
        acc_ref[...] = jnp.zeros_like(acc_ref)

    acc_ref[...] += jnp.dot(x_ref[...], w_ref[...],
                            preferred_element_type=jnp.float32)

    @pl.when(k == pl.num_programs(2) - 1)
    def _():
        y = acc_ref[...] + b_ref[...]
        if activation == "silu":
            y = y * jax.nn.sigmoid(y)
        elif activation == "gelu":
            # Canonical DiT MLP uses nn.GELU(approximate="tanh"); kept tanh.
            y = jax.nn.gelu(y, approximate=True)
        o_ref[...] = y.astype(o_ref.dtype)


def pallas_linear(x, w, b=None, activation="none", out_dtype=None):
    """(..., K) @ (K, N) + b.  bf16 operands in HBM, f32 accumulation, fused act."""
    *lead, K = x.shape
    N = w.shape[1]
    M = int(math.prod(lead)) if lead else 1
    out_dtype = out_dtype or x.dtype

    Mp, tm = _row_tiles(M, _TM)
    Kp, tk = _lane_tiles(K, _TK)
    Np, tn = _lane_tiles(N, _TN)
    nk = Kp // tk

    x2 = _pad_to(x.reshape(M, K).astype(jnp.bfloat16), (Mp, Kp))
    w2 = _pad_to(w.astype(jnp.bfloat16), (Kp, Np))
    b2 = (jnp.zeros((1, Np), jnp.float32) if b is None
          else _pad_to(b.reshape(1, N).astype(jnp.float32), (1, Np)))

    kbuf = _KBUF if nk >= 3 else None
    out = pl.pallas_call(
        functools.partial(_linear_kernel, activation=activation),
        out_shape=jax.ShapeDtypeStruct((Mp, Np), out_dtype),
        grid=(Mp // tm, Np // tn, nk),
        in_specs=[
            _bspec((tm, tk), lambda i, j, k: (i, k), kbuf),
            _bspec((tk, tn), lambda i, j, k: (k, j), kbuf),
            pl.BlockSpec((1, tn), lambda i, j, k: (0, j)),
        ],
        out_specs=pl.BlockSpec((tm, tn), lambda i, j, k: (i, j)),
        scratch_shapes=[pltpu.VMEM((tm, tn), jnp.float32)],
        compiler_params=pltpu.CompilerParams(
            dimension_semantics=("parallel", "parallel", "arbitrary"),
            vmem_limit_bytes=_VMEM_LIMIT),
        cost_estimate=pl.CostEstimate(
            flops=2 * M * K * N,
            transcendentals=(M * N if activation != "none" else 0),
            bytes_accessed=2 * (M * K + K * N)
            + jnp.dtype(out_dtype).itemsize * M * N),
    )(x2, w2, b2)
    return out[:M, :N].reshape(*lead, N)


def _gated_linear_kernel(x_ref, w_ref, b_ref, g_ref, r_ref, o_ref, acc_ref):
    k = pl.program_id(2)
    mf, fp, tk = x_ref.shape

    @pl.when(k == 0)
    def _():
        acc_ref[...] = jnp.zeros_like(acc_ref)

    acc_ref[...] += jnp.dot(x_ref[...].reshape(mf * fp, tk), w_ref[...],
                            preferred_element_type=jnp.float32)

    @pl.when(k == pl.num_programs(2) - 1)
    def _():
        tn = acc_ref.shape[-1]
        y = (acc_ref[...] + b_ref[...]).reshape(mf, fp, tn)
        y = r_ref[...].astype(jnp.float32) + g_ref[...].astype(jnp.float32) * y
        o_ref[...] = y.astype(o_ref.dtype)


def pallas_gated_residual_linear(x, w, b, gate, residual):
    """residual + gate * (x @ w + b), with the adaLN gate kept per-frame.

    x:        (R, Fp, K)  tokens of R frames (frame length already aligned)
    gate:     (R, 1, N)   one gate row per frame (never broadcast per token)
    residual: (R, Fp, N)  f32 residual stream

    Multiple frames are packed into each M tile (MXU M = mf*Fp, not
    tokens-per-frame), and when the bf16 (K, N) weight fits the VMEM budget it
    gets a full-array block with a constant index_map -> fetched once, fully
    resident across the grid (no per-frame weight re-streaming).
    """
    R, Fp, K = x.shape
    N = w.shape[1]
    Kp, tk = _lane_tiles(K, _TK)
    Np, tn = _lane_tiles(N, _TN)
    if Kp * Np * 2 <= _RESIDENT_W_BYTES:
        tk, tn = Kp, Np              # whole weight resident across the grid
    mf = _frames_per_tile(R, Fp, _TM)

    x2 = _pad_to(x.astype(jnp.bfloat16), (R, Fp, Kp))
    w2 = _pad_to(w.astype(jnp.bfloat16), (Kp, Np))
    b2 = (jnp.zeros((1, Np), jnp.float32) if b is None
          else _pad_to(b.reshape(1, N).astype(jnp.float32), (1, Np)))
    g2 = _pad_to(gate.astype(jnp.float32), (R, 1, Np))
    r2 = _pad_to(residual, (R, Fp, Np))

    out = pl.pallas_call(
        _gated_linear_kernel,
        out_shape=jax.ShapeDtypeStruct((R, Fp, Np), residual.dtype),
        grid=(R // mf, Np // tn, Kp // tk),
        in_specs=[
            pl.BlockSpec((mf, Fp, tk), lambda i, j, k: (i, 0, k)),
            pl.BlockSpec((tk, tn), lambda i, j, k: (k, j)),
            pl.BlockSpec((1, tn), lambda i, j, k: (0, j)),
            pl.BlockSpec((mf, 1, tn), lambda i, j, k: (i, 0, j)),
            pl.BlockSpec((mf, Fp, tn), lambda i, j, k: (i, 0, j)),
        ],
        out_specs=pl.BlockSpec((mf, Fp, tn), lambda i, j, k: (i, 0, j)),
        scratch_shapes=[pltpu.VMEM((mf * Fp, tn), jnp.float32)],
        compiler_params=pltpu.CompilerParams(
            dimension_semantics=("parallel", "parallel", "arbitrary"),
            vmem_limit_bytes=_VMEM_LIMIT),
        cost_estimate=pl.CostEstimate(
            flops=2 * R * Fp * K * N, transcendentals=0,
            bytes_accessed=2 * (R * Fp * K + K * N) + 8 * R * Fp * N),
    )(x2, w2, b2, g2, r2)
    return out[:, :, :N]


def _flash_attn_kernel(q_ref, k_ref, v_ref, bias_ref, o_ref,
                       m_ref, l_ref, acc_ref, *, scale):
    ki = pl.program_id(3)

    @pl.when(ki == 0)
    def _():
        m_ref[...] = jnp.full_like(m_ref, -1e30)
        l_ref[...] = jnp.zeros_like(l_ref)
        acc_ref[...] = jnp.zeros_like(acc_ref)

    q = q_ref[0]                                   # (tq, Dh) bf16
    k = k_ref[0]                                   # (tkv, Dh) bf16
    s = jax.lax.dot_general(q, k, (((1,), (1,)), ((), ())),
                            preferred_element_type=jnp.float32) * scale
    s = s + bias_ref[...]                          # (1, tkv) key mask bias
    row_max = jnp.max(s, axis=-1, keepdims=True)   # (tq, 1)
    m_prev = m_ref[...]                            # (tq, Dh) lane-replicated
    m_new = jnp.maximum(m_prev, row_max)           # (tq, Dh)
    alpha = jnp.exp(m_prev - m_new)                # (tq, Dh)
    p = jnp.exp(s - m_new[:, :1])                  # (tq, tkv)
    l_ref[...] = alpha * l_ref[...] + jnp.sum(p, axis=-1, keepdims=True)
    acc_ref[...] = alpha * acc_ref[...] + jnp.dot(
        p.astype(v_ref.dtype), v_ref[0], preferred_element_type=jnp.float32)
    m_ref[...] = m_new

    @pl.when(ki == pl.num_programs(3) - 1)
    def _():
        inv = pl.reciprocal(l_ref[...], approx=True)
        o_ref[0] = (acc_ref[...] * inv).astype(o_ref.dtype)


def pallas_flash_attention(qkv, key_bias, n_heads):
    """Flash-style attention.  q/k/v head slices are read straight from the
    fused (b, S, 3*d) QKV activation via lane-block index_maps (no split or
    head transpose copies).  key_bias (1, S) carries -1e30 at padded key
    positions so frame padding never leaks into attention.  Online-softmax
    stats m/l live in lane-replicated (tq, Dh) scratch (no lane-1 stores)."""
    b, S, d3 = qkv.shape
    d = d3 // 3
    H = n_heads
    Dh = d // H
    # TODO(synk): head_dim that is not a multiple of 128 needs a head re-pack
    # path; lane-dense head blocks are required for efficient stores.
    assert Dh % _LANE == 0, "head_dim must be a multiple of 128"
    scale = 1.0 / math.sqrt(Dh)
    tq = _seq_tile(S, 256)
    tkv = _seq_tile(S, 512 if _BIG_VMEM else 256)

    out = pl.pallas_call(
        functools.partial(_flash_attn_kernel, scale=scale),
        out_shape=jax.ShapeDtypeStruct((b, S, d), qkv.dtype),
        grid=(b, H, S // tq, S // tkv),
        in_specs=[
            pl.BlockSpec((1, tq, Dh), lambda bb, hh, qi, ki: (bb, qi, hh)),
            pl.BlockSpec((1, tkv, Dh), lambda bb, hh, qi, ki: (bb, ki, H + hh)),
            pl.BlockSpec((1, tkv, Dh), lambda bb, hh, qi, ki: (bb, ki, 2 * H + hh)),
            pl.BlockSpec((1, tkv), lambda bb, hh, qi, ki: (0, ki)),
        ],
        out_specs=pl.BlockSpec((1, tq, Dh), lambda bb, hh, qi, ki: (bb, qi, hh)),
        scratch_shapes=[pltpu.VMEM((tq, Dh), jnp.float32),
                        pltpu.VMEM((tq, Dh), jnp.float32),
                        pltpu.VMEM((tq, Dh), jnp.float32)],
        compiler_params=pltpu.CompilerParams(
            dimension_semantics=("parallel", "parallel", "parallel", "arbitrary"),
            vmem_limit_bytes=_VMEM_LIMIT),
        cost_estimate=pl.CostEstimate(
            flops=4 * b * H * S * S * Dh,
            transcendentals=b * H * S * S,
            bytes_accessed=2 * (2 * b * S * d + (S // tq) * 2 * b * S * d)),
    )(qkv, qkv, qkv, key_bias)
    return out


def _ln_mod_kernel(x_ref, sh_ref, sc_ref, o_ref, *, eps):
    x = x_ref[0].astype(jnp.float32)               # (tt, D), stats in f32
    mu = jnp.mean(x, axis=-1, keepdims=True)
    xc = x - mu
    var = jnp.mean(xc * xc, axis=-1, keepdims=True)
    y = xc * jax.lax.rsqrt(var + eps)
    y = y * (1.0 + sc_ref[0].astype(jnp.float32)) + sh_ref[0].astype(jnp.float32)
    o_ref[0] = y.astype(o_ref.dtype)


def pallas_ln_modulate(x, shift, scale, eps=1e-6, out_dtype=None):
    """Fused LayerNorm (no affine, DiT eps=1e-6) + adaLN: ln(x)*(1+scale)+shift.

    x:            (R, T, D)  tokens of R frames
    shift, scale: (R, 1, D)  per-frame modulation picked by the index_map —
                             never materialized per token.
    """
    R, T, D = x.shape
    out_dtype = out_dtype or x.dtype
    tt = _seq_tile(T)
    return pl.pallas_call(
        functools.partial(_ln_mod_kernel, eps=eps),
        out_shape=jax.ShapeDtypeStruct((R, T, D), out_dtype),
        grid=(R, T // tt),
        in_specs=[
            pl.BlockSpec((1, tt, D), lambda r, t: (r, t, 0)),
            pl.BlockSpec((1, 1, D), lambda r, t: (r, 0, 0)),
            pl.BlockSpec((1, 1, D), lambda r, t: (r, 0, 0)),
        ],
        out_specs=pl.BlockSpec((1, tt, D), lambda r, t: (r, t, 0)),
        compiler_params=pltpu.CompilerParams(
            dimension_semantics=("parallel", "parallel")),
    )(x, shift, scale)


_MSE_LANES = 512


def _mse_kernel(a_ref, b_ref, o_ref):
    @pl.when(pl.program_id(0) == 0)
    def _():
        o_ref[...] = jnp.zeros_like(o_ref)

    d = a_ref[...].astype(jnp.float32) - b_ref[...].astype(jnp.float32)
    o_ref[...] += jnp.sum(d * d, axis=0, keepdims=True)


def pallas_mse(a, b):
    """Tiled sum-of-squared-error over 512-lane-wide rows; the (1, 512) partial
    is reduced + averaged in XLA."""
    size = a.size
    rows = pl.cdiv(size, _MSE_LANES)
    rows_p, tm = _row_tiles(rows, 1024)
    padded = rows_p * _MSE_LANES
    a2 = _pad_to(a.reshape(-1), (padded,)).reshape(rows_p, _MSE_LANES)
    b2 = _pad_to(b.reshape(-1), (padded,)).reshape(rows_p, _MSE_LANES)
    partial = pl.pallas_call(
        _mse_kernel,
        out_shape=jax.ShapeDtypeStruct((1, _MSE_LANES), jnp.float32),
        grid=(rows_p // tm,),
        in_specs=[pl.BlockSpec((tm, _MSE_LANES), lambda i: (i, 0)),
                  pl.BlockSpec((tm, _MSE_LANES), lambda i: (i, 0))],
        out_specs=pl.BlockSpec((1, _MSE_LANES), lambda i: (0, 0)),
        compiler_params=pltpu.CompilerParams(
            dimension_semantics=("arbitrary",)),
    )(a2, b2)
    return jnp.sum(partial) / size


# ----------------------------------------------------------------------------
# Model (glue in plain JAX, compute in Pallas)
# ----------------------------------------------------------------------------
def timestep_embedding(t, dim, max_period=10000.0):
    half = dim // 2
    freqs = jnp.exp(-math.log(max_period)
                    * jnp.arange(half, dtype=jnp.float32) / half)
    args = t[..., None].astype(jnp.float32) * freqs
    return jnp.concatenate([jnp.cos(args), jnp.sin(args)], axis=-1)


def dit_block(p, cfg, x, mod, b, n, key_bias):
    """x: (R, Fp, d) f32 residual stream (R = b*n frames); mod: (R, 1, 6d)."""
    R, Fp, d = x.shape
    H = cfg["n_heads"]

    # shift/scale/gate are lane slices of the per-frame modulation — no
    # per-token broadcast is ever materialized.
    sh_msa, sc_msa, g_msa, sh_mlp, sc_mlp, g_mlp = [
        mod[:, :, i * d:(i + 1) * d] for i in range(6)]

    # --- attention ---
    h = pallas_ln_modulate(x, sh_msa, sc_msa, out_dtype=jnp.bfloat16)
    qkv = pallas_linear(h, p["qkv"]["w"], p["qkv"]["b"], out_dtype=jnp.bfloat16)
    qkv = qkv.reshape(b, n * Fp, 3 * d)                # free contiguous reshape
    attn = pallas_flash_attention(qkv, key_bias, H)    # (b, S, d) bf16
    attn = attn.reshape(R, Fp, d)
    # x = x + g_msa * attn_out(attn), fused into the matmul epilogue
    x = pallas_gated_residual_linear(attn, p["attn_out"]["w"], p["attn_out"]["b"],
                                     g_msa, x)

    # --- MLP ---
    h = pallas_ln_modulate(x, sh_mlp, sc_mlp, out_dtype=jnp.bfloat16)
    h = pallas_linear(h, p["mlp1"]["w"], p["mlp1"]["b"], activation="gelu",
                      out_dtype=jnp.bfloat16)          # (R, Fp, 4d)
    # x = x + g_mlp * mlp2(h), fused into the matmul epilogue
    x = pallas_gated_residual_linear(h, p["mlp2"]["w"], p["mlp2"]["b"], g_mlp, x)
    return x


def final_layer(p, x, mod):
    """x: (R, T, d); mod: (R, 1, 2d) precomputed by the batched adaLN matmul."""
    d = x.shape[-1]
    shift, scale = mod[:, :, :d], mod[:, :, d:]
    h = pallas_ln_modulate(x, shift, scale, out_dtype=jnp.bfloat16)
    return pallas_linear(h, p["linear"]["w"], p["linear"]["b"],
                         out_dtype=jnp.float32)


def core_forward(params, cfg, x, audio, t, mouse, btn,
                 kv_cache=None, additive_attn_mask=None):
    # TODO(synk): kv_cache incremental decoding path not implemented.
    # TODO(synk): additive_attn_mask unused (the reference forward passes it
    # positionally into the kv_cache slot, so it never reaches attention).
    b, n, c, h, w = x.shape
    d = cfg["d_model"]
    L = cfg["n_layers"]
    R = b * n
    F = h * w + 1                        # video tokens + 1 audio token per frame
    Fp = _round_up(F, 16)                # sublane / bf16-pack aligned frame length
    S = n * Fp

    # ControlEmbedding: mouse & button projections fused into one matmul
    # (tiny K kept at full width — no 128-lane padding).
    ctrl_in = jnp.concatenate([mouse, btn], axis=-1)
    ctrl_w = jnp.concatenate([params["ctrl_mouse"]["w"], params["ctrl_btn"]["w"]],
                             axis=0)
    ctrl_b = params["ctrl_mouse"]["b"] + params["ctrl_btn"]["b"]
    ctrl = pallas_linear(ctrl_in, ctrl_w, ctrl_b, out_dtype=jnp.float32)

    # TimestepEmbedding: sinusoidal + MLP.
    t_emb = timestep_embedding(t, d)
    t_cond = pallas_linear(
        pallas_linear(t_emb, params["t_mlp1"]["w"], params["t_mlp1"]["b"],
                      activation="silu", out_dtype=jnp.float32),
        params["t_mlp2"]["w"], params["t_mlp2"]["b"], out_dtype=jnp.float32)
    cond = ctrl + t_cond                                 # (b, n, d)
    cond_act = jax.nn.silu(cond)                         # shared SiLU for adaLN

    # adaLN projections of every block + both final layers batched into one
    # matmul over the shared cond activation: (b, n, d) @ (d, 6dL + 4d).
    w_all = jnp.concatenate([blk["adaln"]["w"] for blk in params["blocks"]]
                            + [params["proj_out"]["adaln"]["w"],
                               params["audio_proj_out"]["adaln"]["w"]], axis=1)
    b_all = jnp.concatenate([blk["adaln"]["b"] for blk in params["blocks"]]
                            + [params["proj_out"]["adaln"]["b"],
                               params["audio_proj_out"]["adaln"]["b"]], axis=0)
    mods = pallas_linear(cond_act, w_all, b_all, out_dtype=jnp.float32)
    mods = mods.reshape(R, 1, -1)

    # b n c h w -> b (n h w) c, proj_in (full tiny K), then per-frame assembly:
    # video tokens + audio token, pos-enc over real tokens, pad frame to Fp.
    xt = jnp.transpose(x, (0, 1, 3, 4, 2)).reshape(b, n * h * w, c)
    xt = pallas_linear(xt, params["proj_in"]["w"], None, out_dtype=jnp.float32)
    a = pallas_linear(audio, params["audio_proj_in"]["w"], None,
                      out_dtype=jnp.float32)[:, :, None, :]
    xt = xt.reshape(b, n, h * w, d)
    xt = jnp.concatenate([xt, a], axis=2)                # (b, n, F, d)
    xt = xt + params["pos_enc"].reshape(1, n, F, d)      # LearnedPosEnc
    xt = jnp.pad(xt, ((0, 0), (0, 0), (0, Fp - F), (0, 0)))
    xt = xt.reshape(R, Fp, d)                            # f32 residual stream

    # Key-side attention bias: padded tokens of every frame contribute -1e30.
    frame_pos = jnp.arange(Fp)
    key_bias = jnp.where(frame_pos < F, 0.0, -1e30).astype(jnp.float32)
    key_bias = jnp.tile(key_bias, n).reshape(1, S)

    for li, blk in enumerate(params["blocks"]):
        mod_i = mods[:, :, li * 6 * d:(li + 1) * 6 * d]
        xt = dit_block(blk, cfg, xt, mod_i, b, n, key_bias)

    off = L * 6 * d
    video_mod = mods[:, :, off:off + 2 * d]
    audio_mod = mods[:, :, off + 2 * d:off + 4 * d]

    video_tok = xt[:, :h * w, :]                         # (R, h*w, d)
    audio_tok = xt[:, F - 1:F, :]                        # (R, 1, d)

    video = final_layer(params["proj_out"], video_tok, video_mod)   # (R, h*w, c)
    video = video.reshape(b, n, h, w, c).transpose(0, 1, 4, 2, 3)    # b n c h w
    audio_out = final_layer(params["audio_proj_out"], audio_tok, audio_mod)
    audio_out = audio_out.reshape(b, n, cfg["audio_channels"])
    return video, audio_out


def gamerft_audio_forward(params, cfg, key, x, audio, mouse, btn,
                          return_dict=False, cfg_prob=None, additive_attn_mask=None):
    b, n, c, h, w = x.shape
    if cfg_prob is None:
        cfg_prob = cfg["cfg_prob"]
    k_mask, k_ts, k_zv, k_za = jax.random.split(key, 4)

    if cfg_prob > 0.0:
        # NB: the reference compares against self.cfg_prob (not the override);
        # reproduced verbatim.
        mask = jax.random.uniform(k_mask, (b,)) <= cfg["cfg_prob"]
        mouse = jnp.where(mask[:, None, None], jnp.zeros_like(mouse), mouse)
        btn = jnp.where(mask[:, None, None], jnp.zeros_like(btn), btn)

    ts = jax.nn.sigmoid(jax.random.normal(k_ts, (b, n), x.dtype))
    ts_exp = ts[:, :, None, None, None]
    z_video = jax.random.normal(k_zv, x.shape, x.dtype)
    lerpd_video = x * (1.0 - ts_exp) + z_video * ts_exp
    target_video = z_video - x

    ts_a = ts[:, :, None]
    z_audio = jax.random.normal(k_za, audio.shape, audio.dtype)
    lerpd_audio = audio * (1.0 - ts_a) + z_audio * ts_a
    target_audio = z_audio - audio

    # NB: the reference calls core(..., additive_attn_mask) positionally into
    # the kv_cache slot; we reproduce that (mask is effectively unused).
    pred_video, pred_audio = core_forward(params, cfg, lerpd_video, lerpd_audio,
                                          ts, mouse, btn, additive_attn_mask)

    video_loss = pallas_mse(pred_video, target_video)
    audio_loss = pallas_mse(pred_audio, target_audio)
    diff_loss = video_loss + audio_loss
    if not return_dict:
        return diff_loss
    return {"diffusion_loss": diff_loss, "video_loss": video_loss,
            "audio_loss": audio_loss, "lerpd_video": lerpd_video,
            "lerpd_audio": lerpd_audio, "pred_video": pred_video,
            "pred_audio": pred_audio, "ts": ts, "z_video": z_video,
            "z_audio": z_audio}


# ----------------------------------------------------------------------------
# Deterministic parameter init (synthetic, no checkpoint).  Weights are stored
# bf16 (MXU operand dtype); biases / pos-enc stay f32.
# ----------------------------------------------------------------------------
def init_params(key, cfg):
    d = cfg["d_model"]

    def dense(k, fin, fout, bias=True):
        w = (jax.random.normal(k, (fin, fout), jnp.float32) * 0.02).astype(jnp.bfloat16)
        bb = jnp.zeros((fout,), jnp.float32) if bias else None
        return {"w": w, "b": bb}

    keys = iter(jax.random.split(key, 64))
    p = {}
    p["ctrl_mouse"] = dense(next(keys), 2, d)
    p["ctrl_btn"] = dense(next(keys), cfg["n_buttons"], d)
    p["t_mlp1"] = dense(next(keys), d, d)
    p["t_mlp2"] = dense(next(keys), d, d)
    p["proj_in"] = dense(next(keys), cfg["channels"], d, bias=False)
    p["audio_proj_in"] = dense(next(keys), cfg["audio_channels"], d, bias=False)
    seq = cfg["tokens_per_frame"] * cfg["n_frames"]
    p["pos_enc"] = jax.random.normal(next(keys), (1, seq, d), jnp.float32) * 0.02
    p["blocks"] = []
    for _ in range(cfg["n_layers"]):
        p["blocks"].append({
            "adaln": dense(next(keys), d, 6 * d),
            "qkv": dense(next(keys), d, 3 * d),
            "attn_out": dense(next(keys), d, d),
            "mlp1": dense(next(keys), d, 4 * d),
            "mlp2": dense(next(keys), 4 * d, d),
        })
    p["proj_out"] = {"adaln": dense(next(keys), d, 2 * d),
                     "linear": dense(next(keys), d, cfg["channels"])}
    p["audio_proj_out"] = {"adaln": dense(next(keys), d, 2 * d),
                           "linear": dense(next(keys), d, cfg["audio_channels"])}
    return p


# ----------------------------------------------------------------------------
if __name__ == "__main__":
    cfg = dict(
        channels=4,
        audio_channels=8,
        d_model=128,                 # head_dim = d_model / n_heads = 128 (lane dense)
        n_heads=1,
        n_layers=2,
        n_buttons=8,
        n_frames=2,
        sample_size=4,               # h = w = 4
        tokens_per_frame=4 * 4 + 1,  # h*w video tokens + 1 audio token
        cfg_prob=0.1,
    )

    root = jax.random.PRNGKey(0)
    k_params, k_data = jax.random.split(root)
    params = init_params(k_params, cfg)

    b, n = 2, cfg["n_frames"]
    c, h, w = cfg["channels"], cfg["sample_size"], cfg["sample_size"]
    ks = jax.random.split(k_data, 5)
    x = jax.random.normal(ks[0], (b, n, c, h, w), jnp.float32)
    audio = jax.random.normal(ks[1], (b, n, cfg["audio_channels"]), jnp.float32)
    mouse = jax.random.normal(ks[2], (b, n, 2), jnp.float32)
    btn = (jax.random.uniform(ks[3], (b, n, cfg["n_buttons"])) < 0.5).astype(jnp.float32)

    loss = gamerft_audio_forward(params, cfg, ks[4], x, audio, mouse, btn)
    jax.block_until_ready(loss)
    assert loss.shape == () and jnp.isfinite(loss)
    print("KERNEL_OK")
</pallas_src>

<mosaic_0001>
module attributes {stable_mosaic.version = 11 : i64} {
  func.func @_linear_kernel(%arg0: i32, %arg1: i32, %arg2: i32, %arg3: memref<8x10xbf16, #tpu.memory_space<vmem>>, %arg4: memref<10x128xbf16, #tpu.memory_space<vmem>>, %arg5: memref<1x128xf32, #tpu.memory_space<vmem>>, %arg6: memref<8x128xf32, #tpu.memory_space<vmem>>, %arg7: memref<8x128xf32, #tpu.memory_space<vmem>>) attributes {dimension_semantics = [#tpu.dimension_semantics<parallel>, #tpu.dimension_semantics<parallel>, #tpu.dimension_semantics<arbitrary>], iteration_bounds = array<i64: 1, 1, 1>, scalar_prefetch = 0 : i64, scratch_operands = 1 : i64, tpu.core_type = #tpu.core_type<tc>, window_params = [{transform_indices = @transform_0, window_bounds = array<i64: 8, 10>}, {transform_indices = @transform_1, window_bounds = array<i64: 10, 128>}, {transform_indices = @transform_2, window_bounds = array<i64: 1, 128>}, {transform_indices = @transform_3, window_bounds = array<i64: 8, 128>}]} {
    %c0_i32 = arith.constant 0 : i32
    %0 = arith.cmpi eq, %arg2, %c0_i32 : i32
    %1 = arith.extui %0 : i1 to i32
    %c0_i32_0 = arith.constant 0 : i32
    %2 = arith.cmpi ne, %1, %c0_i32_0 : i32
    scf.if %2 {
      %cst_10 = arith.constant 0.000000e+00 : f32
      %12 = vector.broadcast %cst_10 : f32 to vector<8x128xf32>
      %c0_11 = arith.constant 0 : index
      %c0_12 = arith.constant 0 : index
      %13 = vector.load %arg7[%c0_11, %c0_12] : memref<8x128xf32, #tpu.memory_space<vmem>>, vector<8x128xf32>
      tpu.vector_store %arg7[%c0_11, %c0_12], %12 {strides = array<i32>} : memref<8x128xf32, #tpu.memory_space<vmem>>, vector<8x128xf32>,
    } else {
    }
    %c0 = arith.constant 0 : index
    %c0_1 = arith.constant 0 : index
    %3 = vector.load %arg7[%c0, %c0_1] : memref<8x128xf32, #tpu.memory_space<vmem>>, vector<8x128xf32>
    %c0_2 = arith.constant 0 : index
    %c0_3 = arith.constant 0 : index
    %4 = vector.load %arg3[%c0_2, %c0_3] : memref<8x10xbf16, #tpu.memory_space<vmem>>, vector<8x10xbf16>
    %c0_4 = arith.constant 0 : index
    %c0_5 = arith.constant 0 : index
    %5 = vector.load %arg4[%c0_4, %c0_5] : memref<10x128xbf16, #tpu.memory_space<vmem>>, vector<10x128xbf16>
    %cst = arith.constant dense<0.000000e+00> : vector<8x128xf32>
    %6 = tpu.matmul %4, %5, %cst {dimension_numbers = #tpu.dot_dimension_numbers<[1], [0], [0], [1], [0, 0, 1, 1], [], []>} : vector<8x10xbf16>, vector<10x128xbf16>, vector<8x128xf32> -> vector<8x128xf32>
    %7 = arith.addf %3, %6 : vector<8x128xf32>
    %c0_6 = arith.constant 0 : index
    %c0_7 = arith.constant 0 : index
    %8 = vector.load %arg7[%c0_6, %c0_7] : memref<8x128xf32, #tpu.memory_space<vmem>>, vector<8x128xf32>
    tpu.vector_store %arg7[%c0_6, %c0_7], %7 {strides = array<i32>} : memref<8x128xf32, #tpu.memory_space<vmem>>, vector<8x128xf32>,
    %c0_i32_8 = arith.constant 0 : i32
    %9 = arith.cmpi eq, %arg2, %c0_i32_8 : i32
    %10 = arith.extui %9 : i1 to i32
    %c0_i32_9 = arith.constant 0 : i32
    %11 = arith.cmpi ne, %10, %c0_i32_9 : i32
    scf.if %11 {
      %c0_10 = arith.constant 0 : index
      %c0_11 = arith.constant 0 : index
      %12 = vector.load %arg7[%c0_10, %c0_11] : memref<8x128xf32, #tpu.memory_space<vmem>>, vector<8x128xf32>
      %c0_12 = arith.constant 0 : index
      %c0_13 = arith.constant 0 : index
      %13 = vector.load %arg5[%c0_12, %c0_13] : memref<1x128xf32, #tpu.memory_space<vmem>>, vector<1x128xf32>
      %14 = vector.broadcast %13 : vector<1x128xf32> to vector<8x128xf32>
      %15 = arith.addf %12, %14 : vector<8x128xf32>
      %c0_14 = arith.constant 0 : index
      %c0_15 = arith.constant 0 : index
      %16 = vector.load %arg6[%c0_14, %c0_15] : memref<8x128xf32, #tpu.memory_space<vmem>>, vector<8x128xf32>
      tpu.vector_store %arg6[%c0_14, %c0_15], %15 {strides = array<i32>} : memref<8x128xf32, #tpu.memory_space<vmem>>, vector<8x128xf32>,
    } else {
    }
    return
  }
  func.func @transform_0(%arg0: i32, %arg1: i32, %arg2: i32) -> (i32, i32) {
    %c0_i32 = arith.constant 0 : i32
    return %arg0, %arg2 : i32, i32
  }
  func.func @transform_1(%arg0: i32, %arg1: i32, %arg2: i32) -> (i32, i32) {
    %c0_i32 = arith.constant 0 : i32
    return %arg2, %arg1 : i32, i32
  }
  func.func @transform_2(%arg0: i32, %arg1: i32, %arg2: i32) -> (i32, i32) {
    %c0_i32 = arith.constant 0 : i32
    %c0_i32_0 = arith.constant 0 : i32
    return %c0_i32, %arg1 : i32, i32
  }
  func.func @transform_3(%arg0: i32, %arg1: i32, %arg2: i32) -> (i32, i32) {
    %c0_i32 = arith.constant 0 : i32
    return %arg0, %arg1 : i32, i32
  }
}

</mosaic_0001>

<bundles_post_ra>
// kernel: tpu_custom_call.1
= control target key start
LH: loop header
LB: loop body
LE: loop exit
PB: predicated region body
PF: predicated region fallthrough
CT: control target
= control target key end

     0   :  { %8 = vsyncpa [#allocation4], 0  ;;  %s299_s0 = inlined_call_operand.hbm [shape: bf16[8,10], index: 0, kind: input, shape index: {}]   ;;  %s300_s1 = inlined_call_operand.hbm [shape: bf16[10,128], index: 1, kind: input, shape index: {}]   ;;  %s301_s2 = inlined_call_operand.vmem [shape: f32[1,128], index: 2, kind: input, shape index: {}]   ;;  %s302_s3 = inlined_call_operand.hbm [shape: f32[8,128], index: 3, kind: output, shape index: {}]  }
   0x1   :  { %9 = vsyncpa [#allocation7], 0 }
   0x2   :  { %10 = vsyncpa [#allocation5], 0  ;;  %s226_s12 = smov [#allocation3]   ;;  %s227_s14 = smov [#allocation6]  }
   0x3   :  { %s17_s13 = sshll.u32 %s226_s12, 4  ;;  %s26_s15 = sshll.u32 %s227_s14, 4  ;;  %s18_s13 = int_to_ptr.vmem [resolvable:$true] %s17_s13  ;;  %s253_s15 = int_to_ptr.vmem [resolvable:$true] %s26_s15 }
   0x4   :  { %s154_s18 = scalar_lea.hbm %s299_s0, 64 }
   0x5   :  { %p155_p0 = scmp.ne.s32.totalorder %s299_s0, %s154_s18  ;;  %p158_p1 = scmp.lt.u32.totalorder %s154_s18, %s299_s0 }
   0x7   :  { %p160_p2 = pnand %p158_p1, %p155_p0 }
   0x9   :  { %163 = shalt.err (!%p160_p2)
}
   0xa   :  { %s164_s23 = scalar_lea.vmem %s18_s13, 64  ;;  %p169_p4 = scmp.lt.s32.totalorder %s18_s13, %s18_s13 }
   0xb   :  { %p165_p3 = scmp.ne.s32.totalorder %s18_s13, %s164_s23  ;;  %p170_p5 = scmp.lt.s32.totalorder %s164_s23, %s164_s23 }
   0xd   :  { %p171_p6 = por %p170_p5, %p169_p4 }
   0xf   :  { %p172_p7 = pnand %p171_p6, %p165_p3 }
  0x11   :  { %175 = shalt.err (!%p172_p7)
}
  0x12   :  { %20 = dma.hbm_to_vmem [thread:$0]  %s299_s0, 64, %s18_s13, [#allocation4]  }
  0x13   :  { %s176_s28 = scalar_lea.hbm %s300_s1, 128 }
  0x14   :  { %p177_p8 = scmp.ne.s32.totalorder %s300_s1, %s176_s28  ;;  %p180_p9 = scmp.lt.u32.totalorder %s176_s28, %s300_s1 }
  0x16   :  { %p182_p10 = pnand %p180_p9, %p177_p8 }
  0x18   :  { %185 = shalt.err (!%p182_p10)
}
  0x19   :  { %s186_s6 = scalar_lea.vmem %s253_s15, 128  ;;  %p191_p12 = scmp.lt.s32.totalorder %s253_s15, %s253_s15 }
  0x1a   :  { %p187_p11 = scmp.ne.s32.totalorder %s253_s15, %s186_s6  ;;  %p192_p13 = scmp.lt.s32.totalorder %s186_s6, %s186_s6 }
  0x1c   :  { %p193_p0 = por %p192_p13, %p191_p12 }
  0x1e   :  { %p194_p1 = pnand %p193_p0, %p187_p11 }
  0x20   :  { %197 = shalt.err (!%p194_p1)
}
  0x21   :  { %s228_s0 = smov 64   ;;  %s229_s7 = smov 4  }
  0x22   :  { %32 = dma.hbm_to_vmem [thread:$0]  %s300_s1, 128, %s253_s15, [#allocation7], %s228_s0, %s228_s0, %s229_s7  }
  0x23   :  { %220 = dma.done.wait [#allocation4], 64  }
  0x24   :  { %221 = vsyncadd [#allocation4], 4294967232 }
  0x25   :  { %222 = dma.done.wait [#allocation7], 128  }
  0x26   :  { %223 = vsyncadd [#allocation7], 4294967168  ;;  %v230_v0 = vmov 0.0   ;;  %vm231_vm0 = vmmov 0   ;;  %vm60_vm1 = vcmask 1044480   ;;  %vm56_vm2 = vcmask 80896  }
  0x27   :  { %140 = vmatprep.subr.bf16.mxu0 %v230_v0  ;;  %142 = vmatprep.mubr.msk.bf16.mxu0 %vm231_vm0, %v230_v0  ;;  %v153_v1 = vld [vmem:[#allocation6] sm:$0x1f]   ;;  %v48_v3 = vld [vmem:[#allocation3] sm:$0xf]  ;;  %s232_s1 = smov [#allocation8]  }
  0x28   :  { %v62_v2 = vsel %vm60_vm1, %v153_v1, 0  ;;  %v137_v4 = vld [vmem:[%s301_s2] ss:$0 sm:$0xff]  ;;  %s125_s12 = sshll.u32 %s232_s1, 4  ;;  %s126_s12 = int_to_ptr.vmem [resolvable:$true] %s125_s12 }
  0x29   :  { %141 = vmatpush3.bf16.msra.mxu0 %v62_v2  ;;  %s198_s13 = scalar_lea.vmem %s126_s12, 128  ;;  %p203_p3 = scmp.lt.s32.totalorder %s126_s12, %s126_s12 }
  0x2a   :  { %p199_p2 = scmp.ne.s32.totalorder %s126_s12, %s198_s13  ;;  %p204_p4 = scmp.lt.s32.totalorder %s198_s13, %s198_s13 }
  0x2c   :  { %143 = vmatmul.mubr.msk.bf16.vlgmr.msra.gmra.mrb[0].mxu0 %vm56_vm2, %v48_v3  ;;  %p205_p5 = por %p204_p4, %p203_p3 }
  0x2e   :  { %p206_p6 = pnand %p205_p5, %p199_p2 }
  0xff   :  { %v98_v5 = vpop.f32.mrb[0].mxu0 }
 0x100   :  { %v117_v6 = vadd.f32 %v137_v4, %v98_v5  ;;  %v144_v7 = vpop.f32.mrb[1].mxu0 }
 0x101   :  { %v101_v8 = vpop.f32.mrb[2].mxu0 }
 0x102   :  { %118 = vst [vmem:[#allocation8] sm:$0xff] %v117_v6  ;;  %v145_v9 = vpop.f32.mrb[3].mxu0 }
 0x103   :  { %209 = shalt.err (!%p206_p6)
}
 0x104   :  { %s210_s2 = scalar_lea.hbm %s302_s3, 128 }
 0x105   :  { %p211_p7 = scmp.ne.s32.totalorder %s302_s3, %s210_s2  ;;  %p214_p8 = scmp.lt.u32.totalorder %s210_s2, %s302_s3 }
 0x107   :  { %p216_p9 = pnand %p214_p8, %p211_p7 }
 0x109   :  { %219 = shalt.err (!%p216_p9)
}
 0x10a   :  { %128 = dma.vmem_to_hbm [thread:$0]  %s126_s12, 128, %s302_s3, [#allocation5]  }
 0x10b   :  { %224 = dma.done.wait [#allocation5], 128  }
 0x10c   :  { %225 = vsyncadd [#allocation5], 4294967168 }
 0x10d   :  { %132 = vsyncpa [#allocation4], 1 }
 0x10e   :  { %133 = vsyncpa [#allocation7], 1 }
 0x10f   :  { %134 = vsyncpa [#allocation5], 1 }

</bundles_post_ra>
